<compile_context>
chip_gen: v7x
topology: tpu7x:2x2x1
jax: 0.10.0
libtpu: 0.0.40
codegen_flags: <defaults>
</compile_context>

<pallas_src>
import jax
import jax.numpy as jnp
from jax.experimental import pallas as pl
from jax.experimental.pallas import tpu as pltpu

# ----------------------------- config (small shapes) -----------------------------
S, B, E = 8, 2, 32          # seq, batch, embed_dim
N_HEADS = 4
HEAD_DIM = E // N_HEADS
MLP_RATIO = 4.0
HIDDEN = int(E * MLP_RATIO)
LN_EPS = 1e-5

# bf16 on v6e/v7x at real model sizes (operands only; f32 accumulation is kept via
# preferred_element_type).  f32 here preserves parity with the f32 reference.
MATMUL_DTYPE = jnp.float32


# ----------------------------- shared math helpers -------------------------------
def _layernorm(x, gamma, beta):
    mu = jnp.mean(x, axis=-1, keepdims=True)
    var = jnp.mean((x - mu) ** 2, axis=-1, keepdims=True)
    return (x - mu) * jax.lax.rsqrt(var + LN_EPS) * gamma + beta


def _gelu_exact(x):
    # nn.GELU() default (exact, erf-based) — kept exact for parity with PyTorch.
    return 0.5 * x * (1.0 + jax.lax.erf(x * 0.7071067811865476))


# ----------------------------- the Pallas kernel ----------------------------------
def transformer_block_kernel(
    x_ref,                       # (S, E)   one batch element's tokens
    ln1_g_ref, ln1_b_ref,        # (1, E)
    wqkv_ref, bqkv_ref,          # (E, 3E), (1, 3E)  — 1/sqrt(hd) folded into Q cols/bias
    wo_ref, bo_ref,              # (E, E),  (1, E)   — rows head-major
    ln2_g_ref, ln2_b_ref,        # (1, E)
    w1_ref, b1_ref,              # (E, HIDDEN), (1, HIDDEN)
    w2_ref, b2_ref,              # (HIDDEN, E), (1, E)
    o_ref,                       # (S, E)
):
    x = x_ref[...]                                               # (S, E)

    # ---- LayerNorm 1 ----
    y = _layernorm(x, ln1_g_ref[...], ln1_b_ref[...]).astype(MATMUL_DTYPE)

    # ---- Fused QKV projection: one lane-dense matmul + one bias ----
    qkv = jnp.dot(y, wqkv_ref[...].astype(MATMUL_DTYPE),
                  preferred_element_type=jnp.float32) + bqkv_ref[...]   # (S, 3E)

    # ---- Multi-head self-attention (within this batch element; no mask needed) ----
    # head_dim = 8 at this toy size, so any head layout is a sub-vreg lane slice; the
    # H=4 head loop below is unrolled at trace time and emits the same MXU work as a
    # head-batched einsum while avoiding lane-splitting relayouts.  The head-sum of
    # the output projection is fused into the accumulation (K-split of the single
    # (S,E)@(E,E) projection dot), so there is no (H, S, E) intermediate.
    # TODO(synk): at real sizes (head_dim >= 128, long S) replace this block with a
    # flash-style online-softmax loop over KV tiles on a grid axis, with head_dim
    # lane-resident so the score-matmul contraction K is >= 128 (v5e) / 256 (v6e/v7x).
    attn = jnp.zeros((S, E), jnp.float32)
    for h in range(N_HEADS):
        lo = h * HEAD_DIM
        q_h = qkv[:, lo:lo + HEAD_DIM]                           # (S, hd), scale folded in
        k_h = qkv[:, E + lo:E + lo + HEAD_DIM]                   # (S, hd)
        v_h = qkv[:, 2 * E + lo:2 * E + lo + HEAD_DIM]           # (S, hd)

        s = jnp.dot(q_h.astype(MATMUL_DTYPE), k_h.astype(MATMUL_DTYPE).T,
                    preferred_element_type=jnp.float32)          # (S, S), f32 scores
        s = s - jnp.max(s, axis=-1, keepdims=True)
        p = jnp.exp(s)
        p = p * pl.reciprocal(jnp.sum(p, axis=-1, keepdims=True), approx=True)

        ctx_h = jnp.dot(p.astype(MATMUL_DTYPE), v_h.astype(MATMUL_DTYPE),
                        preferred_element_type=jnp.float32)      # (S, hd)

        # Output projection with the head-sum fused in (no (H,S,E) intermediate).
        attn = attn + jnp.dot(ctx_h.astype(MATMUL_DTYPE),
                              wo_ref[lo:lo + HEAD_DIM, :].astype(MATMUL_DTYPE),
                              preferred_element_type=jnp.float32)
    attn = attn + bo_ref[...]
    # attention / projection dropout: identity in eval mode.

    # ---- residual 1 ----
    out1 = attn + x

    # ---- LayerNorm 2 + MLP ----
    y2 = _layernorm(out1, ln2_g_ref[...], ln2_b_ref[...]).astype(MATMUL_DTYPE)
    h1 = jnp.dot(y2, w1_ref[...].astype(MATMUL_DTYPE),
                 preferred_element_type=jnp.float32) + b1_ref[...]
    h1 = _gelu_exact(h1)
    h2 = jnp.dot(h1.astype(MATMUL_DTYPE), w2_ref[...].astype(MATMUL_DTYPE),
                 preferred_element_type=jnp.float32) + b2_ref[...]
    # TODO(synk): training-mode dropout (attention + MLP, p=0.1) not implemented —
    # this kernel is the eval/inference forward.

    # ---- residual 2 ----
    # At real model sizes keep E a multiple of 128 for a lane-dense (unmasked) store.
    o_ref[...] = h2 + out1


# ----------------------------- wrapper -------------------------------------------
def _resident_spec(shape):
    nd = len(shape)
    return pl.BlockSpec(shape, lambda b: (0,) * nd)   # constant index_map -> resident


def prepare_params(params):
    """One-time re-layout of PyTorch-layout weights into kernel layout.

    Hoisted out of the per-call path: the fused (E, 3E) QKV slab, the fused (1, 3E)
    bias, all transposes, and the 1/sqrt(head_dim) attention-scale fold happen here
    exactly once.
    """
    scale = 1.0 / float(HEAD_DIM) ** 0.5
    in_w = params["in_w"]                                  # (3E, E) PyTorch (out, in)
    in_b = params["in_b"].reshape(3 * E)                   # (3E,)

    # Columns ordered [Q | K | V], each internally head-major; Q columns pre-scaled.
    col_scale = jnp.concatenate(
        [jnp.full((E,), scale, jnp.float32), jnp.ones((2 * E,), jnp.float32)])
    w_qkv = in_w.T * col_scale[None, :]                    # (E, 3E)
    b_qkv = (in_b * col_scale).reshape(1, 3 * E)           # (1, 3E)

    w_o = params["out_w"].T                                # (E, E), rows head-major
    b_o = params["out_b"].reshape(1, E)

    return (params["ln1_g"], params["ln1_b"],
            w_qkv, b_qkv, w_o, b_o,
            params["ln2_g"], params["ln2_b"],
            params["w1"].T, params["b1"], params["w2"].T, params["b2"])


@jax.jit
def transformer_block(x, prep):
    """x: (S, B, E), seq-first like nn.MultiheadAttention's default layout."""
    # Batch-major layout plumbing lives in the wrapper, not in the kernel.
    xb = jnp.transpose(x, (1, 0, 2))                       # (B, S, E)
    token_spec = pl.BlockSpec((None, S, E), lambda b: (b, 0, 0))
    in_specs = [token_spec] + [_resident_spec(p.shape) for p in prep]

    out = pl.pallas_call(
        transformer_block_kernel,
        out_shape=jax.ShapeDtypeStruct((B, S, E), jnp.float32),
        grid=(B,),
        in_specs=in_specs,
        out_specs=pl.BlockSpec((None, S, E), lambda b: (b, 0, 0)),
        compiler_params=pltpu.CompilerParams(
            # Independent per-batch work: "parallel" lets v7x shard the grid across
            # its 2 TensorCores; no-op on v5e/v6e.
            dimension_semantics=("parallel",),
            # TODO(synk): at real sizes raise vmem_limit_bytes (scoped defaults are
            # 16/32/32 MiB on v5e/v6e/v7x) and re-derive tiles against v7x's 64 MiB
            # physical VMEM (stream W1/W2 and KV tiles over additional grid axes).
        ),
    )(xb, *prep)
    return jnp.transpose(out, (1, 0, 2))                   # back to (S, B, E)


# ----------------------------- pure-JAX reference ---------------------------------
def reference(x, p):
    x2d = x.reshape(S * B, E)
    y = _layernorm(x2d, p["ln1_g"], p["ln1_b"])
    qkv = y @ p["in_w"].T + p["in_b"]
    q, k, v = jnp.split(qkv, 3, axis=-1)

    def to_heads(t):  # (S*B, E) -> (B, nH, S, hd)
        return t.reshape(S, B, N_HEADS, HEAD_DIM).transpose(1, 2, 0, 3)

    q, k, v = map(to_heads, (q, k, v))
    scores = jnp.einsum("bhsd,bhtd->bhst", q, k) / jnp.sqrt(jnp.float32(HEAD_DIM))
    attn = jax.nn.softmax(scores, axis=-1)
    a = jnp.einsum("bhst,bhtd->bhsd", attn, v)
    a = a.transpose(2, 0, 1, 3).reshape(S * B, E)
    attn_out = a @ p["out_w"].T + p["out_b"]
    out1 = attn_out + x2d
    y2 = _layernorm(out1, p["ln2_g"], p["ln2_b"])
    h = _gelu_exact(y2 @ p["w1"].T + p["b1"])
    h2 = h @ p["w2"].T + p["b2"]
    return (h2 + out1).reshape(S, B, E)


# ----------------------------- main -----------------------------------------------
if __name__ == "__main__":
    key = jax.random.PRNGKey(0)
    ks = jax.random.split(key, 13)

    def rn(k, shape, scale=0.05):
        return (scale * jax.random.normal(k, shape)).astype(jnp.float32)

    params = {
        # LayerNorm 1 / 2 (affine params kept as (1, E) rows for VMEM friendliness)
        "ln1_g": 1.0 + rn(ks[0], (1, E)), "ln1_b": rn(ks[1], (1, E)),
        "ln2_g": 1.0 + rn(ks[2], (1, E)), "ln2_b": rn(ks[3], (1, E)),
        # MultiheadAttention: in_proj (3E, E), out_proj (E, E), PyTorch (out, in) layout
        "in_w": rn(ks[4], (3 * E, E)), "in_b": rn(ks[5], (1, 3 * E)),
        "out_w": rn(ks[6], (E, E)), "out_b": rn(ks[7], (1, E)),
        # MLP: Linear(E -> HIDDEN), Linear(HIDDEN -> E), PyTorch (out, in) layout
        "w1": rn(ks[8], (HIDDEN, E)), "b1": rn(ks[9], (1, HIDDEN)),
        "w2": rn(ks[10], (E, HIDDEN)), "b2": rn(ks[11], (1, E)),
    }

    x = rn(ks[12], (S, B, E), scale=1.0)

    prep = prepare_params(params)            # one-time weight re-layout (hoisted)
    prep = jax.tree_util.tree_map(jax.block_until_ready, prep)

    out = transformer_block(x, prep)
    out = jax.block_until_ready(out)

    ref = reference(x, params)
    assert out.shape == (S, B, E)
    max_err = float(jnp.max(jnp.abs(out - ref)))
    # Tolerance slightly loosened vs. 2e-4 because the softmax denominator uses the
    # EUP approx reciprocal (pl.reciprocal(..., approx=True)).
    assert jnp.allclose(out, ref, atol=2e-3, rtol=2e-3), max_err

    print("KERNEL_OK")
</pallas_src>

<mosaic_0001>
module attributes {stable_mosaic.version = 11 : i64} {
  func.func @transformer_block_kernel(%arg0: i32, %arg1: memref<1x8x32xf32, #tpu.memory_space<vmem>>, %arg2: memref<1x32xf32, #tpu.memory_space<vmem>>, %arg3: memref<1x32xf32, #tpu.memory_space<vmem>>, %arg4: memref<32x96xf32, #tpu.memory_space<vmem>>, %arg5: memref<1x96xf32, #tpu.memory_space<vmem>>, %arg6: memref<32x32xf32, #tpu.memory_space<vmem>>, %arg7: memref<1x32xf32, #tpu.memory_space<vmem>>, %arg8: memref<1x32xf32, #tpu.memory_space<vmem>>, %arg9: memref<1x32xf32, #tpu.memory_space<vmem>>, %arg10: memref<32x128xf32, #tpu.memory_space<vmem>>, %arg11: memref<1x128xf32, #tpu.memory_space<vmem>>, %arg12: memref<128x32xf32, #tpu.memory_space<vmem>>, %arg13: memref<1x32xf32, #tpu.memory_space<vmem>>, %arg14: memref<1x8x32xf32, #tpu.memory_space<vmem>>) attributes {dimension_semantics = [#tpu.dimension_semantics<parallel>], iteration_bounds = array<i64: 2>, scalar_prefetch = 0 : i64, scratch_operands = 0 : i64, tpu.core_type = #tpu.core_type<tc>, window_params = [{transform_indices = @transform_0, window_bounds = array<i64: 1, 8, 32>}, {pipeline_mode = #tpu.pipeline_mode<synchronous>, transform_indices = @transform_1, window_bounds = array<i64: 1, 32>}, {pipeline_mode = #tpu.pipeline_mode<synchronous>, transform_indices = @transform_2, window_bounds = array<i64: 1, 32>}, {pipeline_mode = #tpu.pipeline_mode<synchronous>, transform_indices = @transform_3, window_bounds = array<i64: 32, 96>}, {pipeline_mode = #tpu.pipeline_mode<synchronous>, transform_indices = @transform_4, window_bounds = array<i64: 1, 96>}, {pipeline_mode = #tpu.pipeline_mode<synchronous>, transform_indices = @transform_5, window_bounds = array<i64: 32, 32>}, {pipeline_mode = #tpu.pipeline_mode<synchronous>, transform_indices = @transform_6, window_bounds = array<i64: 1, 32>}, {pipeline_mode = #tpu.pipeline_mode<synchronous>, transform_indices = @transform_7, window_bounds = array<i64: 1, 32>}, {pipeline_mode = #tpu.pipeline_mode<synchronous>, transform_indices = @transform_8, window_bounds = array<i64: 1, 32>}, {pipeline_mode = #tpu.pipeline_mode<synchronous>, transform_indices = @transform_9, window_bounds = array<i64: 32, 128>}, {pipeline_mode = #tpu.pipeline_mode<synchronous>, transform_indices = @transform_10, window_bounds = array<i64: 1, 128>}, {pipeline_mode = #tpu.pipeline_mode<synchronous>, transform_indices = @transform_11, window_bounds = array<i64: 128, 32>}, {pipeline_mode = #tpu.pipeline_mode<synchronous>, transform_indices = @transform_12, window_bounds = array<i64: 1, 32>}, {transform_indices = @transform_13, window_bounds = array<i64: 1, 8, 32>}]} {
    %c0 = arith.constant 0 : index
    %c0_0 = arith.constant 0 : index
    %c0_1 = arith.constant 0 : index
    %0 = vector.load %arg1[%c0, %c0_0, %c0_1] : memref<1x8x32xf32, #tpu.memory_space<vmem>>, vector<1x8x32xf32>
    %1 = vector.shape_cast %0 : vector<1x8x32xf32> to vector<8x32xf32>
    %c0_2 = arith.constant 0 : index
    %c0_3 = arith.constant 0 : index
    %2 = vector.load %arg2[%c0_2, %c0_3] : memref<1x32xf32, #tpu.memory_space<vmem>>, vector<1x32xf32>
    %c0_4 = arith.constant 0 : index
    %c0_5 = arith.constant 0 : index
    %3 = vector.load %arg3[%c0_4, %c0_5] : memref<1x32xf32, #tpu.memory_space<vmem>>, vector<1x32xf32>
    %cst = arith.constant dense<0.000000e+00> : vector<8xf32>
    %4 = vector.multi_reduction <add>, %1, %cst [1] : vector<8x32xf32> to vector<8xf32>
    %5 = vector.shape_cast %4 : vector<8xf32> to vector<8x1xf32>
    %cst_6 = arith.constant 3.200000e+01 : f32
    %6 = vector.broadcast %cst_6 : f32 to vector<8x1xf32>
    %7 = arith.divf %5, %6 : vector<8x1xf32>
    %8 = vector.broadcast %7 : vector<8x1xf32> to vector<8x32xf32>
    %9 = arith.subf %1, %8 : vector<8x32xf32>
    %10 = arith.mulf %9, %9 : vector<8x32xf32>
    %cst_7 = arith.constant dense<0.000000e+00> : vector<8xf32>
    %11 = vector.multi_reduction <add>, %10, %cst_7 [1] : vector<8x32xf32> to vector<8xf32>
    %12 = vector.shape_cast %11 : vector<8xf32> to vector<8x1xf32>
    %cst_8 = arith.constant 3.200000e+01 : f32
    %13 = vector.broadcast %cst_8 : f32 to vector<8x1xf32>
    %14 = arith.divf %12, %13 : vector<8x1xf32>
    %15 = vector.broadcast %7 : vector<8x1xf32> to vector<8x32xf32>
    %16 = arith.subf %1, %15 : vector<8x32xf32>
    %cst_9 = arith.constant 9.99999974E-6 : f32
    %17 = vector.broadcast %cst_9 : f32 to vector<8x1xf32>
    %18 = arith.addf %14, %17 : vector<8x1xf32>
    %19 = math.rsqrt %18 : vector<8x1xf32>
    %20 = vector.broadcast %19 : vector<8x1xf32> to vector<8x32xf32>
    %21 = arith.mulf %16, %20 : vector<8x32xf32>
    %22 = vector.broadcast %2 : vector<1x32xf32> to vector<8x32xf32>
    %23 = arith.mulf %21, %22 : vector<8x32xf32>
    %24 = vector.broadcast %3 : vector<1x32xf32> to vector<8x32xf32>
    %25 = arith.addf %23, %24 : vector<8x32xf32>
    %c0_10 = arith.constant 0 : index
    %c0_11 = arith.constant 0 : index
    %26 = vector.load %arg4[%c0_10, %c0_11] : memref<32x96xf32, #tpu.memory_space<vmem>>, vector<32x96xf32>
    %cst_12 = arith.constant dense<0.000000e+00> : vector<8x96xf32>
    %27 = tpu.matmul %25, %26, %cst_12 {dimension_numbers = #tpu.dot_dimension_numbers<[1], [0], [0], [1], [0, 0, 1, 1], [], []>} : vector<8x32xf32>, vector<32x96xf32>, vector<8x96xf32> -> vector<8x96xf32>
    %c0_13 = arith.constant 0 : index
    %c0_14 = arith.constant 0 : index
    %28 = vector.load %arg5[%c0_13, %c0_14] : memref<1x96xf32, #tpu.memory_space<vmem>>, vector<1x96xf32>
    %29 = vector.broadcast %28 : vector<1x96xf32> to vector<8x96xf32>
    %30 = arith.addf %27, %29 : vector<8x96xf32>
    %cst_15 = arith.constant 0.000000e+00 : f32
    %31 = vector.broadcast %cst_15 : f32 to vector<8x32xf32>
    %32 = vector.extract_strided_slice %30 {offsets = [0, 0], sizes = [8, 8], strides = [1, 1]} : vector<8x96xf32> to vector<8x8xf32>
    %33 = vector.extract_strided_slice %30 {offsets = [0, 32], sizes = [8, 8], strides = [1, 1]} : vector<8x96xf32> to vector<8x8xf32>
    %34 = vector.extract_strided_slice %30 {offsets = [0, 64], sizes = [8, 8], strides = [1, 1]} : vector<8x96xf32> to vector<8x8xf32>
    %35 = tpu.transpose %33, [1, 0] : vector<8x8xf32> -> vector<8x8xf32>
    %cst_16 = arith.constant dense<0.000000e+00> : vector<8x8xf32>
    %36 = tpu.matmul %32, %35, %cst_16 {dimension_numbers = #tpu.dot_dimension_numbers<[1], [0], [0], [1], [0, 0, 1, 1], [], []>} : vector<8x8xf32>, vector<8x8xf32>, vector<8x8xf32> -> vector<8x8xf32>
    %cst_17 = arith.constant dense<0xFF800000> : vector<8xf32>
    %37 = vector.multi_reduction <maximumf>, %36, %cst_17 [1] : vector<8x8xf32> to vector<8xf32>
    %38 = vector.shape_cast %37 : vector<8xf32> to vector<8x1xf32>
    %39 = vector.broadcast %38 : vector<8x1xf32> to vector<8x8xf32>
    %40 = arith.subf %36, %39 : vector<8x8xf32>
    %41 = math.exp %40 : vector<8x8xf32>
    %cst_18 = arith.constant dense<0.000000e+00> : vector<8xf32>
    %42 = vector.multi_reduction <add>, %41, %cst_18 [1] : vector<8x8xf32> to vector<8xf32>
    %43 = vector.shape_cast %42 : vector<8xf32> to vector<8x1xf32>
    %44 = tpu.reciprocal %43 {approx = true} : vector<8x1xf32> -> vector<8x1xf32>
    %45 = vector.broadcast %44 : vector<8x1xf32> to vector<8x8xf32>
    %46 = arith.mulf %41, %45 : vector<8x8xf32>
    %cst_19 = arith.constant dense<0.000000e+00> : vector<8x8xf32>
    %47 = tpu.matmul %46, %34, %cst_19 {dimension_numbers = #tpu.dot_dimension_numbers<[1], [0], [0], [1], [0, 0, 1, 1], [], []>} : vector<8x8xf32>, vector<8x8xf32>, vector<8x8xf32> -> vector<8x8xf32>
    %c0_20 = arith.constant 0 : index
    %c0_21 = arith.constant 0 : index
    %48 = vector.load %arg6[%c0_20, %c0_21] : memref<32x32xf32, #tpu.memory_space<vmem>>, vector<8x32xf32>
    %cst_22 = arith.constant dense<0.000000e+00> : vector<8x32xf32>
    %49 = tpu.matmul %47, %48, %cst_22 {dimension_numbers = #tpu.dot_dimension_numbers<[1], [0], [0], [1], [0, 0, 1, 1], [], []>} : vector<8x8xf32>, vector<8x32xf32>, vector<8x32xf32> -> vector<8x32xf32>
    %50 = arith.addf %31, %49 : vector<8x32xf32>
    %51 = vector.extract_strided_slice %30 {offsets = [0, 8], sizes = [8, 8], strides = [1, 1]} : vector<8x96xf32> to vector<8x8xf32>
    %52 = vector.extract_strided_slice %30 {offsets = [0, 40], sizes = [8, 8], strides = [1, 1]} : vector<8x96xf32> to vector<8x8xf32>
    %53 = vector.extract_strided_slice %30 {offsets = [0, 72], sizes = [8, 8], strides = [1, 1]} : vector<8x96xf32> to vector<8x8xf32>
    %54 = tpu.transpose %52, [1, 0] : vector<8x8xf32> -> vector<8x8xf32>
    %cst_23 = arith.constant dense<0.000000e+00> : vector<8x8xf32>
    %55 = tpu.matmul %51, %54, %cst_23 {dimension_numbers = #tpu.dot_dimension_numbers<[1], [0], [0], [1], [0, 0, 1, 1], [], []>} : vector<8x8xf32>, vector<8x8xf32>, vector<8x8xf32> -> vector<8x8xf32>
    %cst_24 = arith.constant dense<0xFF800000> : vector<8xf32>
    %56 = vector.multi_reduction <maximumf>, %55, %cst_24 [1] : vector<8x8xf32> to vector<8xf32>
    %57 = vector.shape_cast %56 : vector<8xf32> to vector<8x1xf32>
    %58 = vector.broadcast %57 : vector<8x1xf32> to vector<8x8xf32>
    %59 = arith.subf %55, %58 : vector<8x8xf32>
    %60 = math.exp %59 : vector<8x8xf32>
    %cst_25 = arith.constant dense<0.000000e+00> : vector<8xf32>
    %61 = vector.multi_reduction <add>, %60, %cst_25 [1] : vector<8x8xf32> to vector<8xf32>
    %62 = vector.shape_cast %61 : vector<8xf32> to vector<8x1xf32>
    %63 = tpu.reciprocal %62 {approx = true} : vector<8x1xf32> -> vector<8x1xf32>
    %64 = vector.broadcast %63 : vector<8x1xf32> to vector<8x8xf32>
    %65 = arith.mulf %60, %64 : vector<8x8xf32>
    %cst_26 = arith.constant dense<0.000000e+00> : vector<8x8xf32>
    %66 = tpu.matmul %65, %53, %cst_26 {dimension_numbers = #tpu.dot_dimension_numbers<[1], [0], [0], [1], [0, 0, 1, 1], [], []>} : vector<8x8xf32>, vector<8x8xf32>, vector<8x8xf32> -> vector<8x8xf32>
    %c8 = arith.constant 8 : index
    %c0_27 = arith.constant 0 : index
    %67 = vector.load %arg6[%c8, %c0_27] : memref<32x32xf32, #tpu.memory_space<vmem>>, vector<8x32xf32>
    %cst_28 = arith.constant dense<0.000000e+00> : vector<8x32xf32>
    %68 = tpu.matmul %66, %67, %cst_28 {dimension_numbers = #tpu.dot_dimension_numbers<[1], [0], [0], [1], [0, 0, 1, 1], [], []>} : vector<8x8xf32>, vector<8x32xf32>, vector<8x32xf32> -> vector<8x32xf32>
    %69 = arith.addf %50, %68 : vector<8x32xf32>
    %70 = vector.extract_strided_slice %30 {offsets = [0, 16], sizes = [8, 8], strides = [1, 1]} : vector<8x96xf32> to vector<8x8xf32>
    %71 = vector.extract_strided_slice %30 {offsets = [0, 48], sizes = [8, 8], strides = [1, 1]} : vector<8x96xf32> to vector<8x8xf32>
    %72 = vector.extract_strided_slice %30 {offsets = [0, 80], sizes = [8, 8], strides = [1, 1]} : vector<8x96xf32> to vector<8x8xf32>
    %73 = tpu.transpose %71, [1, 0] : vector<8x8xf32> -> vector<8x8xf32>
    %cst_29 = arith.constant dense<0.000000e+00> : vector<8x8xf32>
    %74 = tpu.matmul %70, %73, %cst_29 {dimension_numbers = #tpu.dot_dimension_numbers<[1], [0], [0], [1], [0, 0, 1, 1], [], []>} : vector<8x8xf32>, vector<8x8xf32>, vector<8x8xf32> -> vector<8x8xf32>
    %cst_30 = arith.constant dense<0xFF800000> : vector<8xf32>
    %75 = vector.multi_reduction <maximumf>, %74, %cst_30 [1] : vector<8x8xf32> to vector<8xf32>
    %76 = vector.shape_cast %75 : vector<8xf32> to vector<8x1xf32>
    %77 = vector.broadcast %76 : vector<8x1xf32> to vector<8x8xf32>
    %78 = arith.subf %74, %77 : vector<8x8xf32>
    %79 = math.exp %78 : vector<8x8xf32>
    %cst_31 = arith.constant dense<0.000000e+00> : vector<8xf32>
    %80 = vector.multi_reduction <add>, %79, %cst_31 [1] : vector<8x8xf32> to vector<8xf32>
    %81 = vector.shape_cast %80 : vector<8xf32> to vector<8x1xf32>
    %82 = tpu.reciprocal %81 {approx = true} : vector<8x1xf32> -> vector<8x1xf32>
    %83 = vector.broadcast %82 : vector<8x1xf32> to vector<8x8xf32>
    %84 = arith.mulf %79, %83 : vector<8x8xf32>
    %cst_32 = arith.constant dense<0.000000e+00> : vector<8x8xf32>
    %85 = tpu.matmul %84, %72, %cst_32 {dimension_numbers = #tpu.dot_dimension_numbers<[1], [0], [0], [1], [0, 0, 1, 1], [], []>} : vector<8x8xf32>, vector<8x8xf32>, vector<8x8xf32> -> vector<8x8xf32>
    %c16 = arith.constant 16 : index
    %c0_33 = arith.constant 0 : index
    %86 = vector.load %arg6[%c16, %c0_33] : memref<32x32xf32, #tpu.memory_space<vmem>>, vector<8x32xf32>
    %cst_34 = arith.constant dense<0.000000e+00> : vector<8x32xf32>
    %87 = tpu.matmul %85, %86, %cst_34 {dimension_numbers = #tpu.dot_dimension_numbers<[1], [0], [0], [1], [0, 0, 1, 1], [], []>} : vector<8x8xf32>, vector<8x32xf32>, vector<8x32xf32> -> vector<8x32xf32>
    %88 = arith.addf %69, %87 : vector<8x32xf32>
    %89 = vector.extract_strided_slice %30 {offsets = [0, 24], sizes = [8, 8], strides = [1, 1]} : vector<8x96xf32> to vector<8x8xf32>
    %90 = vector.extract_strided_slice %30 {offsets = [0, 56], sizes = [8, 8], strides = [1, 1]} : vector<8x96xf32> to vector<8x8xf32>
    %91 = vector.extract_strided_slice %30 {offsets = [0, 88], sizes = [8, 8], strides = [1, 1]} : vector<8x96xf32> to vector<8x8xf32>
    %92 = tpu.transpose %90, [1, 0] : vector<8x8xf32> -> vector<8x8xf32>
    %cst_35 = arith.constant dense<0.000000e+00> : vector<8x8xf32>
    %93 = tpu.matmul %89, %92, %cst_35 {dimension_numbers = #tpu.dot_dimension_numbers<[1], [0], [0], [1], [0, 0, 1, 1], [], []>} : vector<8x8xf32>, vector<8x8xf32>, vector<8x8xf32> -> vector<8x8xf32>
    %cst_36 = arith.constant dense<0xFF800000> : vector<8xf32>
    %94 = vector.multi_reduction <maximumf>, %93, %cst_36 [1] : vector<8x8xf32> to vector<8xf32>
    %95 = vector.shape_cast %94 : vector<8xf32> to vector<8x1xf32>
    %96 = vector.broadcast %95 : vector<8x1xf32> to vector<8x8xf32>
    %97 = arith.subf %93, %96 : vector<8x8xf32>
    %98 = math.exp %97 : vector<8x8xf32>
    %cst_37 = arith.constant dense<0.000000e+00> : vector<8xf32>
    %99 = vector.multi_reduction <add>, %98, %cst_37 [1] : vector<8x8xf32> to vector<8xf32>
    %100 = vector.shape_cast %99 : vector<8xf32> to vector<8x1xf32>
    %101 = tpu.reciprocal %100 {approx = true} : vector<8x1xf32> -> vector<8x1xf32>
    %102 = vector.broadcast %101 : vector<8x1xf32> to vector<8x8xf32>
    %103 = arith.mulf %98, %102 : vector<8x8xf32>
    %cst_38 = arith.constant dense<0.000000e+00> : vector<8x8xf32>
    %104 = tpu.matmul %103, %91, %cst_38 {dimension_numbers = #tpu.dot_dimension_numbers<[1], [0], [0], [1], [0, 0, 1, 1], [], []>} : vector<8x8xf32>, vector<8x8xf32>, vector<8x8xf32> -> vector<8x8xf32>
    %c24 = arith.constant 24 : index
    %c0_39 = arith.constant 0 : index
    %105 = vector.load %arg6[%c24, %c0_39] : memref<32x32xf32, #tpu.memory_space<vmem>>, vector<8x32xf32>
    %cst_40 = arith.constant dense<0.000000e+00> : vector<8x32xf32>
    %106 = tpu.matmul %104, %105, %cst_40 {dimension_numbers = #tpu.dot_dimension_numbers<[1], [0], [0], [1], [0, 0, 1, 1], [], []>} : vector<8x8xf32>, vector<8x32xf32>, vector<8x32xf32> -> vector<8x32xf32>
    %107 = arith.addf %88, %106 : vector<8x32xf32>
    %c0_41 = arith.constant 0 : index
    %c0_42 = arith.constant 0 : index
    %108 = vector.load %arg7[%c0_41, %c0_42] : memref<1x32xf32, #tpu.memory_space<vmem>>, vector<1x32xf32>
    %109 = vector.broadcast %108 : vector<1x32xf32> to vector<8x32xf32>
    %110 = arith.addf %107, %109 : vector<8x32xf32>
    %111 = arith.addf %110, %1 : vector<8x32xf32>
    %c0_43 = arith.constant 0 : index
    %c0_44 = arith.constant 0 : index
    %112 = vector.load %arg8[%c0_43, %c0_44] : memref<1x32xf32, #tpu.memory_space<vmem>>, vector<1x32xf32>
    %c0_45 = arith.constant 0 : index
    %c0_46 = arith.constant 0 : index
    %113 = vector.load %arg9[%c0_45, %c0_46] : memref<1x32xf32, #tpu.memory_space<vmem>>, vector<1x32xf32>
    %cst_47 = arith.constant dense<0.000000e+00> : vector<8xf32>
    %114 = vector.multi_reduction <add>, %111, %cst_47 [1] : vector<8x32xf32> to vector<8xf32>
    %115 = vector.shape_cast %114 : vector<8xf32> to vector<8x1xf32>
    %cst_48 = arith.constant 3.200000e+01 : f32
    %116 = vector.broadcast %cst_48 : f32 to vector<8x1xf32>
    %117 = arith.divf %115, %116 : vector<8x1xf32>
    %118 = vector.broadcast %117 : vector<8x1xf32> to vector<8x32xf32>
    %119 = arith.subf %111, %118 : vector<8x32xf32>
    %120 = arith.mulf %119, %119 : vector<8x32xf32>
    %cst_49 = arith.constant dense<0.000000e+00> : vector<8xf32>
    %121 = vector.multi_reduction <add>, %120, %cst_49 [1] : vector<8x32xf32> to vector<8xf32>
    %122 = vector.shape_cast %121 : vector<8xf32> to vector<8x1xf32>
    %cst_50 = arith.constant 3.200000e+01 : f32
    %123 = vector.broadcast %cst_50 : f32 to vector<8x1xf32>
    %124 = arith.divf %122, %123 : vector<8x1xf32>
    %125 = vector.broadcast %117 : vector<8x1xf32> to vector<8x32xf32>
    %126 = arith.subf %111, %125 : vector<8x32xf32>
    %cst_51 = arith.constant 9.99999974E-6 : f32
    %127 = vector.broadcast %cst_51 : f32 to vector<8x1xf32>
    %128 = arith.addf %124, %127 : vector<8x1xf32>
    %129 = math.rsqrt %128 : vector<8x1xf32>
    %130 = vector.broadcast %129 : vector<8x1xf32> to vector<8x32xf32>
    %131 = arith.mulf %126, %130 : vector<8x32xf32>
    %132 = vector.broadcast %112 : vector<1x32xf32> to vector<8x32xf32>
    %133 = arith.mulf %131, %132 : vector<8x32xf32>
    %134 = vector.broadcast %113 : vector<1x32xf32> to vector<8x32xf32>
    %135 = arith.addf %133, %134 : vector<8x32xf32>
    %c0_52 = arith.constant 0 : index
    %c0_53 = arith.constant 0 : index
    %136 = vector.load %arg10[%c0_52, %c0_53] : memref<32x128xf32, #tpu.memory_space<vmem>>, vector<32x128xf32>
    %cst_54 = arith.constant dense<0.000000e+00> : vector<8x128xf32>
    %137 = tpu.matmul %135, %136, %cst_54 {dimension_numbers = #tpu.dot_dimension_numbers<[1], [0], [0], [1], [0, 0, 1, 1], [], []>} : vector<8x32xf32>, vector<32x128xf32>, vector<8x128xf32> -> vector<8x128xf32>
    %c0_55 = arith.constant 0 : index
    %c0_56 = arith.constant 0 : index
    %138 = vector.load %arg11[%c0_55, %c0_56] : memref<1x128xf32, #tpu.memory_space<vmem>>, vector<1x128xf32>
    %139 = vector.broadcast %138 : vector<1x128xf32> to vector<8x128xf32>
    %140 = arith.addf %137, %139 : vector<8x128xf32>
    %cst_57 = arith.constant 5.000000e-01 : f32
    %141 = vector.broadcast %cst_57 : f32 to vector<8x128xf32>
    %142 = arith.mulf %141, %140 : vector<8x128xf32>
    %cst_58 = arith.constant 0.707106769 : f32
    %143 = vector.broadcast %cst_58 : f32 to vector<8x128xf32>
    %144 = arith.mulf %140, %143 : vector<8x128xf32>
    %145 = math.erf %144 : vector<8x128xf32>
    %cst_59 = arith.constant 1.000000e+00 : f32
    %146 = vector.broadcast %cst_59 : f32 to vector<8x128xf32>
    %147 = arith.addf %146, %145 : vector<8x128xf32>
    %148 = arith.mulf %142, %147 : vector<8x128xf32>
    %c0_60 = arith.constant 0 : index
    %c0_61 = arith.constant 0 : index
    %149 = vector.load %arg12[%c0_60, %c0_61] : memref<128x32xf32, #tpu.memory_space<vmem>>, vector<128x32xf32>
    %cst_62 = arith.constant dense<0.000000e+00> : vector<8x32xf32>
    %150 = tpu.matmul %148, %149, %cst_62 {dimension_numbers = #tpu.dot_dimension_numbers<[1], [0], [0], [1], [0, 0, 1, 1], [], []>} : vector<8x128xf32>, vector<128x32xf32>, vector<8x32xf32> -> vector<8x32xf32>
    %c0_63 = arith.constant 0 : index
    %c0_64 = arith.constant 0 : index
    %151 = vector.load %arg13[%c0_63, %c0_64] : memref<1x32xf32, #tpu.memory_space<vmem>>, vector<1x32xf32>
    %152 = vector.broadcast %151 : vector<1x32xf32> to vector<8x32xf32>
    %153 = arith.addf %150, %152 : vector<8x32xf32>
    %154 = arith.addf %153, %111 : vector<8x32xf32>
    %c0_65 = arith.constant 0 : index
    %c0_66 = arith.constant 0 : index
    %c0_67 = arith.constant 0 : index
    %155 = vector.load %arg14[%c0_65, %c0_66, %c0_67] : memref<1x8x32xf32, #tpu.memory_space<vmem>>, vector<1x8x32xf32>
    %156 = vector.shape_cast %155 : vector<1x8x32xf32> to vector<8x32xf32>
    %157 = vector.shape_cast %154 : vector<8x32xf32> to vector<1x8x32xf32>
    tpu.vector_store %arg14[%c0_65, %c0_66, %c0_67], %157 {strides = array<i32>} : memref<1x8x32xf32, #tpu.memory_space<vmem>>, vector<1x8x32xf32>,
    return
  }
  func.func @transform_0(%arg0: i32) -> (i32, i32, i32) {
    %c0_i32 = arith.constant 0 : i32
    %c0_i32_0 = arith.constant 0 : i32
    %c0_i32_1 = arith.constant 0 : i32
    return %arg0, %c0_i32, %c0_i32_0 : i32, i32, i32
  }
  func.func @transform_1(%arg0: i32) -> (i32, i32) {
    %c0_i32 = arith.constant 0 : i32
    %c0_i32_0 = arith.constant 0 : i32
    %c0_i32_1 = arith.constant 0 : i32
    return %c0_i32, %c0_i32_0 : i32, i32
  }
  func.func @transform_2(%arg0: i32) -> (i32, i32) {
    %c0_i32 = arith.constant 0 : i32
    %c0_i32_0 = arith.constant 0 : i32
    %c0_i32_1 = arith.constant 0 : i32
    return %c0_i32, %c0_i32_0 : i32, i32
  }
  func.func @transform_3(%arg0: i32) -> (i32, i32) {
    %c0_i32 = arith.constant 0 : i32
    %c0_i32_0 = arith.constant 0 : i32
    %c0_i32_1 = arith.constant 0 : i32
    return %c0_i32, %c0_i32_0 : i32, i32
  }
  func.func @transform_4(%arg0: i32) -> (i32, i32) {
    %c0_i32 = arith.constant 0 : i32
    %c0_i32_0 = arith.constant 0 : i32
    %c0_i32_1 = arith.constant 0 : i32
    return %c0_i32, %c0_i32_0 : i32, i32
  }
  func.func @transform_5(%arg0: i32) -> (i32, i32) {
    %c0_i32 = arith.constant 0 : i32
    %c0_i32_0 = arith.constant 0 : i32
    %c0_i32_1 = arith.constant 0 : i32
    return %c0_i32, %c0_i32_0 : i32, i32
  }
  func.func @transform_6(%arg0: i32) -> (i32, i32) {
    %c0_i32 = arith.constant 0 : i32
    %c0_i32_0 = arith.constant 0 : i32
    %c0_i32_1 = arith.constant 0 : i32
    return %c0_i32, %c0_i32_0 : i32, i32
  }
  func.func @transform_7(%arg0: i32) -> (i32, i32) {
    %c0_i32 = arith.constant 0 : i32
    %c0_i32_0 = arith.constant 0 : i32
    %c0_i32_1 = arith.constant 0 : i32
    return %c0_i32, %c0_i32_0 : i32, i32
  }
  func.func @transform_8(%arg0: i32) -> (i32, i32) {
    %c0_i32 = arith.constant 0 : i32
    %c0_i32_0 = arith.constant 0 : i32
    %c0_i32_1 = arith.constant 0 : i32
    return %c0_i32, %c0_i32_0 : i32, i32
  }
  func.func @transform_9(%arg0: i32) -> (i32, i32) {
    %c0_i32 = arith.constant 0 : i32
    %c0_i32_0 = arith.constant 0 : i32
    %c0_i32_1 = arith.constant 0 : i32
    return %c0_i32, %c0_i32_0 : i32, i32
  }
  func.func @transform_10(%arg0: i32) -> (i32, i32) {
    %c0_i32 = arith.constant 0 : i32
    %c0_i32_0 = arith.constant 0 : i32
    %c0_i32_1 = arith.constant 0 : i32
    return %c0_i32, %c0_i32_0 : i32, i32
  }
  func.func @transform_11(%arg0: i32) -> (i32, i32) {
    %c0_i32 = arith.constant 0 : i32
    %c0_i32_0 = arith.constant 0 : i32
    %c0_i32_1 = arith.constant 0 : i32
    return %c0_i32, %c0_i32_0 : i32, i32
  }
  func.func @transform_12(%arg0: i32) -> (i32, i32) {
    %c0_i32 = arith.constant 0 : i32
    %c0_i32_0 = arith.constant 0 : i32
    %c0_i32_1 = arith.constant 0 : i32
    return %c0_i32, %c0_i32_0 : i32, i32
  }
  func.func @transform_13(%arg0: i32) -> (i32, i32, i32) {
    %c0_i32 = arith.constant 0 : i32
    %c0_i32_0 = arith.constant 0 : i32
    %c0_i32_1 = arith.constant 0 : i32
    return %arg0, %c0_i32, %c0_i32_0 : i32, i32, i32
  }
}

</mosaic_0001>

<bundles_post_ra>
// kernel: transformer_block.1
= control target key start
LH: loop header
LB: loop body
LE: loop exit
PB: predicated region body
PF: predicated region fallthrough
CT: control target
= control target key end

     0   :  { %s2160_s25 = smov 0   ;;  %s2401_s0 = inlined_call_operand.vmem [shape: f32[2,8,32], index: 0, kind: input, shape index: {}]   ;;  %s2402_s1 = inlined_call_operand.vmem [shape: f32[1,32], index: 1, kind: input, shape index: {}]   ;;  %s2403_s2 = inlined_call_operand.vmem [shape: f32[1,32], index: 2, kind: input, shape index: {}]   ;;  %s2404_s3 = inlined_call_operand.vmem [shape: f32[32,96], index: 3, kind: input, shape index: {}]   ;;  %s2405_s4 = inlined_call_operand.vmem [shape: f32[1,96], index: 4, kind: input, shape index: {}]   ;;  %s2406_s5 = inlined_call_operand.vmem [shape: f32[32,32], index: 5, kind: input, shape index: {}]   ;;  %s2407_s6 = inlined_call_operand.vmem [shape: f32[1,32], index: 6, kind: input, shape index: {}]   ;;  %s2408_s7 = inlined_call_operand.vmem [shape: f32[1,32], index: 7, kind: input, shape index: {}]   ;;  %s2409_s8 = inlined_call_operand.vmem [shape: f32[1,32], index: 8, kind: input, shape index: {}]   ;;  %s2410_s9 = inlined_call_operand.vmem [shape: f32[32,128], index: 9, kind: input, shape index: {}]   ;;  %s2411_s10 = inlined_call_operand.vmem [shape: f32[1,128], index: 10, kind: input, shape index: {}]   ;;  %s2412_s11 = inlined_call_operand.vmem [shape: f32[128,32], index: 11, kind: input, shape index: {}]   ;;  %s2413_s12 = inlined_call_operand.vmem [shape: f32[1,32], index: 12, kind: input, shape index: {}]   ;;  %s2414_s13 = inlined_call_operand.vmem [shape: f32[2,8,32], index: 13, kind: output, shape index: {}]  }
   0x1 LB: > { %s1785_s26 = sadd.s32 4294967295, %s2074_s25   ;;  %p1789_p0 = scmp.ge.s32.totalorder %s2074_s25, 1  ;;  %s2074_s25 = sphi %s2160_s25, %s23_s25  }
   0x2   : > { %p386_p1 = scmp.lt.s32.totalorder %s2074_s25, 3 }
   0x4   : > { %p387_p2 = pnand %p1789_p0, %p386_p1 }
   0x5   : > { %p428_p3 = scmp.lt.s32.totalorder (!%p387_p2), %s1785_s26, 1  ;;  %vm439_vm0 = vcmask (!%p387_p2), 261120   ;;  %v468_v7 = vld [vmem:[%s2404_s3] sm:$0xff] (!%p387_p2)  ;;  %v469_v8 = vld [vmem:[%s2404_s3 + $0x8] sm:$0xff] (!%p387_p2)  ;;  %v470_v9 = vld [vmem:[%s2404_s3 + $0x10] sm:$0xff] (!%p387_p2)  ;;  %v2076_v10 = vmov (!%p387_p2), 0.0|0.0  }
   0x6   : > { %390 = sbr.rel (%p387_p2) target bundleno = 4181 (0x1055), region = 72  ;;  %1988 = vmatprep.subr.bf16.mxu0 (!%p387_p2), %v2076_v10  ;;  %v1989_v11 = vpack.c.bf16 (!%p387_p2), %v469_v8, %v468_v7  ;;  %v471_v12 = vld [vmem:[%s2404_s3 + $0x18] sm:$0xff] (!%p387_p2)  ;;  %vm2077_vm1 = vmmov (!%p387_p2), 0   ;;  %v2078_v13 = vmov (!%p387_p2), 0.0   ;;  %v1792_v19 = vld [vmem:[%s2402_s1] ss:$0 sm:$0xff] (!%p387_p2) }
   0x7   : > { %1879 = vmatprep.mubr.msk.f32.mxu0 (!%p387_p2), %vm2077_vm1, %v2078_v13  ;;  %1907 = vmatprep.subr.mxu1 (!%p387_p2), %v2078_v13  ;;  %v1992_v14 = vpack.c.bf16 (!%p387_p2), %v471_v12, %v470_v9  ;;  %v1793_v21 = vld [vmem:[%s2403_s2] ss:$0 sm:$0xff] (!%p387_p2)  ;;  %s2079_s14 = smov (!%p387_p2), 64   ;;  %s2080_s15 = smov (!%p387_p2), 96   ;;  %vm555_vm2 = vcmask (!%p387_p2), 64512   ;;  %v883_v61 = vld [vmem:[%s2406_s5 + $0x8] sm:$0xff] (!%p387_p2) }
   0x8   : > { %1909 = vmatprep.mubr.msk.f32.mxu1 (!%p387_p2), %vm2077_vm1, %v2078_v13  ;;  %1990 = vmatpush3.bf16.msra.mxu0 (!%p387_p2), %v1989_v11  ;;  %v1794_v24 = vld [vmem:[%s2405_s4] ss:$0 sm:$0xff] (!%p387_p2)  ;;  %s2081_s16 = smov (!%p387_p2), 88   ;;  %s2082_s17 = smov (!%p387_p2), 120  }
   0x9   : > { %1991 = vmatprep.subr.bf16.mxu0 (!%p387_p2), %v2076_v10  ;;  %v717_v43 = vld [vmem:[%s2406_s5] sm:$0xff] (!%p387_p2)  ;;  %s2083_s20 = smov (!%p387_p2), 56   ;;  %s2084_s21 = smov (!%p387_p2), 80  }
   0xa   : > { %1908 = vmatpush3.msra.mxu1 (!%p387_p2), %v717_v43  ;;  %s2085_s22 = smov (!%p387_p2), 112   ;;  %s2086_s23 = smov (!%p387_p2), 48   ;;  %v1812_v43 = vld [vmem:[%s2407_s6] ss:$0 sm:$0xff] (!%p387_p2) }
   0xb   : > { %1917 = vmatprep.subr.mxu1 (!%p387_p2), %v2078_v13  ;;  %s2087_s24 = smov (!%p387_p2), 72  }
   0xc   : > { %1993 = vmatpush3.bf16.msra.mxu0 (!%p387_p2), %v1992_v14 }
   0xd   : > { %s2416_s26 = smov (!%p428_p3, %s1785_s26), 1  ;;  %1882 = vmatprep.subr.mxu0 %v2078_v13 }
   0xe   : > { %s1790_s27 = sshll.u32 %s2416_s26, 3 }
   0xf   : > { %s431_s30 = scalar_lea.vmem %s2401_s0, %s1790_s27 }
  0x10   : > { %v2176_v0 = vld [vmem:[%s431_s30] sm:$0xff]  ;;  %s2088_s30 = smov 104  }
  0x11   : > { %v440_v1 = vsel %vm439_vm0, %v2176_v0, 0.0 }
  0x12   : > { %441 = vadd.xlane.f32.xlu0 %v440_v1 }
  0x9f   : > { %v442_v2 = vpop.xlane.xlu0 %441 }
  0xa0   : > { %v444_v3 = vmul.f32 0.03125, %v442_v2 }
  0xa2   : > { %v445_v4 = vsub.f32 %v2176_v0, %v444_v3 }
  0xa4   : > { %v446_v5 = vmul.f32 %v445_v4, %v445_v4 }
  0xa6   : > { %v447_v6 = vsel %vm439_vm0, %v446_v5, 0.0 }
  0xa7   : > { %448 = vadd.xlane.f32.xlu0 %v447_v6 }
 0x134   : > { %v449_v15 = vpop.xlane.xlu0 %448 }
 0x135   : > { %v450_v16 = vmul.f32 0.03125, %v449_v15 }
 0x137   : > { %v451_v17 = vadd.f32 1e-05, %v450_v16 }
 0x139   : > { %2046 = vrsqrt.f32 %v451_v17 }
 0x143   : > { %v2047_v18 = vpop.eup %2046 }
 0x144   : > { %v453_v20 = vmul.f32 %v2047_v18, %v445_v4 }
 0x146   : > { %v460_v22 = vmul.f32 %v1792_v19, %v453_v20 }
 0x148   : > { %v467_v23 = vadd.f32 %v1793_v21, %v460_v22  ;;  %v1195_v21 = vld [vmem:[%s2406_s5 + $0x10] sm:$0xff] }
 0x14a   : > { %1880 = vmatmul.mubr.msk.f32.vlgmr.msra.gmra.mrb[0].mxu0 %vm439_vm0, %v467_v23 }
 0x14b   : > { %1884 = vmatprep.mubr.msk.f32.mxu0 %vm2077_vm1, %v2078_v13 }
 0x21d   : > { %v548_v25 = vpop.f32.mrb[0].mxu0 }
 0x21e   : > { %v2214_v26 = vadd.f32 %v1794_v24, %v548_v25  ;;  %v1881_v27 = vpop.f32.mrb[1].mxu0 }
 0x220   : > { %641 = vrot.lane.b32.xlu0 %v2214_v26, %s2079_s14  ;;  %553 = vrot.lane.b32.xlu1 %v2214_v26, %s2080_s15  ;;  %s435_s15 = scalar_lea.vmem %s2414_s13, %s1790_s27 }
 0x224   : > { %720 = vrot.lane.b32.xlu0 %v2214_v26, %s2081_s16  ;;  %s2089_s16 = smov 40  }
 0x292   : > { %v554_v28 = vpop.permute.xlu1 %553  ;;  %v642_v29 = vpop.permute.xlu0 %641 }
 0x293   : > { %1883 = vmatpush3.xpose.msk.msra.mxu0 %vm555_vm2, %v554_v28 }
 0x294   : > { %1887 = vmatprep.subr.mxu0 %v2078_v13 }
 0x296   : > { %1885 = vmatmul.mubr.msk.f32.vlgmr.msra.gmra.mrb[2].mxu0 %vm555_vm2, %v2214_v26  ;;  %v721_v38 = vpop.permute.xlu0 %720 }
 0x297   : > { %1888 = vmatpush3.msra.mxu0 %v642_v29  ;;  %1889 = vmatprep.mubr.msk.f32.mxu0 %vm2077_vm1, %v2078_v13 }
 0x298   : > { %1892 = vmatprep.subr.mxu0 %v2078_v13 }
 0x369   : > { %v626_v30 = vpop.f32.mrb[2].mxu0 }
 0x36a   : > { %v1886_v31 = vpop.f32.mrb[3].mxu0  ;;  %v630_v32 = vsel %vm555_vm2, %v626_v30, -inf }
 0x36b   : > { %631 = vmax.xlane.f32.xlu1 %v630_v32 }
 0x3f8   : > { %v632_v33 = vpop.xlane.xlu1 %631 }
 0x3f9   : > { %v633_v34 = vsub.f32 %v626_v30, %v632_v33 }
 0x3fb   : > { %v634_v35 = vmul.f32 1.442695, %v633_v34  ;;  %v1435_v34 = vld [vmem:[%s2406_s5 + $0x18] sm:$0xff] }
 0x3fd   : > { %2048 = vpow2.f32 %v634_v35 }
 0x407   : > { %v2049_v36 = vpop.eup %2048 }
 0x408   : > { %v636_v37 = vsel %vm555_vm2, %v2049_v36, 0.0 }
 0x409   : > { %637 = vadd.xlane.f32.xlu0 %v636_v37 }
 0x41f   : > { %718 = vrot.lane.b32.xlu0 %v2214_v26, %s2082_s17 }
 0x496   : > { %v638_v39 = vpop.xlane.xlu0 %637 }
 0x497   : > { %2050 = vrcp.f32 %v638_v39 }
 0x49a   : > { %v719_v42 = vpop.permute.xlu0 %718 }
 0x4a1   : > { %v2051_v40 = vpop.eup %2050 }
 0x4a2   : > { %v640_v41 = vmul.f32 %v2051_v40, %v2049_v36 }
 0x4a4   : > { %1890 = vmatmul.mubr.msk.f32.vlgmr.msra.gmra.mrb[4].mxu0 %vm555_vm2, %v640_v41 }
 0x4a5   : > { %1893 = vmatpush3.xpose.msk.msra.mxu0 %vm555_vm2, %v721_v38  ;;  %1894 = vmatprep.mubr.msk.f32.mxu0 %vm2077_vm1, %v2078_v13 }
 0x4a6   : > { %1897 = vmatprep.subr.mxu0 %v2078_v13 }
 0x4a8   : > { %1895 = vmatmul.mubr.msk.f32.vlgmr.msra.gmra.mrb[6].mxu0 %vm555_vm2, %v719_v42 }
 0x4a9   : > { %1899 = vmatprep.mubr.msk.f32.mxu0 %vm2077_vm1, %v2078_v13 }
 0x577   : > { %v713_v44 = vpop.f32.mrb[4].mxu0 }
 0x578   : > { %v1891_v45 = vpop.f32.mrb[5].mxu0  ;;  %1910 = vmatmul.mubr.msk.f32.vlgmr.msra.gmra.mrb[0].mxu1 %vm555_vm2, %v713_v44 }
 0x579   : > { %1919 = vmatprep.mubr.msk.f32.mxu1 %vm2077_vm1, %v2078_v13 }
 0x57b   : > { %v792_v46 = vpop.f32.mrb[6].mxu0 }
 0x57c   : > { %v1896_v47 = vpop.f32.mrb[7].mxu0  ;;  %v796_v48 = vsel %vm555_vm2, %v792_v46, -inf }
 0x57d   : > { %797 = vmax.xlane.f32.xlu1 %v796_v48 }
 0x58e   : > { %807 = vrot.lane.b32.xlu1 %v2214_v26, %s2083_s20 }
 0x592   : > { %1032 = vrot.lane.b32.xlu1 %v2214_v26, %s2084_s21 }
 0x596   : > { %1030 = vrot.lane.b32.xlu1 %v2214_v26, %s2085_s22 }
 0x60a   : > { %v798_v49 = vpop.xlane.xlu1 %797 }
 0x60b   : > { %v799_v50 = vsub.f32 %v792_v46, %v798_v49 }
 0x60d   : > { %v800_v51 = vmul.f32 1.442695, %v799_v50 }
 0x60e   : > { %v808_v52 = vpop.permute.xlu1 %807 }
 0x60f   : > { %2052 = vpow2.f32 %v800_v51  ;;  %1898 = vmatpush3.msra.mxu0 %v808_v52 }
 0x610   : > { %1902 = vmatprep.subr.mxu0 %v2078_v13 }
 0x612   : > { %v1033_v62 = vpop.permute.xlu1 %1032 }
 0x616   : > { %v1031_v2 = vpop.permute.xlu1 %1030 }
 0x619   : > { %v2053_v53 = vpop.eup %2052 }
 0x61a   : > { %v802_v54 = vsel %vm555_vm2, %v2053_v53, 0.0 }
 0x61b   : > { %803 = vadd.xlane.f32.xlu0 %v802_v54 }
 0x631   : > { %1119 = vrot.lane.b32.xlu0 %v2214_v26, %s2086_s23 }
 0x635   : > { %1272 = vrot.lane.b32.xlu0 %v2214_v26, %s2087_s24 }
 0x64b   : > { %v1026_v55 = vpop.f32.mrb[0].mxu1 }
 0x64c   : > { %v1911_v56 = vpop.f32.mrb[1].mxu1 }
 0x64d   : > { %v1551_v56 = vld [vmem:[%s2410_s9 + $0x18] sm:$0xff] }
 0x6a8   : > { %v804_v57 = vpop.xlane.xlu0 %803 }
 0x6a9   : > { %2054 = vrcp.f32 %v804_v57 }
 0x6ac   : > { %v1120_v58 = vpop.permute.xlu0 %1119 }
 0x6ad   : > { %1918 = vmatpush3.msra.mxu1 %v1120_v58  ;;  %v1637_v58 = vld [vmem:[%s2412_s11] sm:$0xff] }
 0x6ae   : > { %1927 = vmatprep.subr.mxu1 %v2078_v13 }
 0x6b0   : > { %v1273_v16 = vpop.permute.xlu0 %1272 }
 0x6b3   : > { %v2055_v59 = vpop.eup %2054 }
 0x6b4   : > { %v806_v60 = vmul.f32 %v2055_v59, %v2053_v53  ;;  %v1548_v53 = vld [vmem:[%s2410_s9] sm:$0xff]  ;;  %v1638_v59 = vld [vmem:[%s2412_s11 + $0x8] sm:$0xff] }
 0x6b6   : > { %1900 = vmatmul.mubr.msk.f32.vlgmr.msra.gmra.mrb[8].mxu0 %vm555_vm2, %v806_v60  ;;  %v1639_v60 = vld [vmem:[%s2412_s11 + $0x10] sm:$0xff] }
 0x6b7   : > { %1903 = vmatpush3.msra.mxu0 %v883_v61  ;;  %1904 = vmatprep.mubr.msk.f32.mxu0 %vm2077_vm1, %v2078_v13  ;;  %v2001_v61 = vpack.c.bf16 %v1638_v59, %v1637_v58 }
 0x6b8   : > { %1912 = vmatprep.subr.mxu0 %v2078_v13 }
 0x789   : > { %v879_v63 = vpop.f32.mrb[8].mxu0 }
 0x78a   : > { %v1901_v1 = vpop.f32.mrb[9].mxu0  ;;  %1905 = vmatmul.mubr.msk.f32.vlgmr.msra.gmra.mrb[10].mxu0 %vm555_vm2, %v879_v63 }
 0x78b   : > { %1913 = vmatpush3.xpose.msk.msra.mxu0 %vm555_vm2, %v1033_v62  ;;  %1914 = vmatprep.mubr.msk.f32.mxu0 %vm2077_vm1, %v2078_v13  ;;  %v1640_v62 = vld [vmem:[%s2412_s11 + $0x18] sm:$0xff]  ;;  %v1641_v1 = vld [vmem:[%s2412_s11 + $0x20] sm:$0xff] }
 0x78c   : > { %1922 = vmatprep.subr.mxu0 %v2078_v13  ;;  %v2004_v63 = vpack.c.bf16 %v1640_v62, %v1639_v60 }
 0x78e   : > { %1915 = vmatmul.mubr.msk.f32.vlgmr.msra.gmra.mrb[12].mxu0 %vm555_vm2, %v1031_v2  ;;  %v1642_v2 = vld [vmem:[%s2412_s11 + $0x28] sm:$0xff] }
 0x78f   : > { %1924 = vmatprep.mubr.msk.f32.mxu0 %vm2077_vm1, %v2078_v13  ;;  %1923 = vmatpush3.msra.mxu0 %v1195_v21  ;;  %v1647_v21 = vld [vmem:[%s2412_s11 + $0x50] sm:$0xff] }
 0x790   : > { %1932 = vmatprep.subr.mxu0 %v2078_v13 }
 0x85d   : > { %v953_v3 = vpop.f32.mrb[10].mxu0 }
 0x85e   : > { %v1027_v4 = vadd.f32 %v1026_v55, %v953_v3  ;;  %v1906_v5 = vpop.f32.mrb[11].mxu0  ;;  %v1550_v55 = vld [vmem:[%s2410_s9 + $0x10] sm:$0xff]  ;;  %v2007_v3 = vpack.c.bf16 %v1642_v2, %v1641_v1 }
 0x85f   : > { %v1998_v57 = vpack.c.bf16 %v1551_v56, %v1550_v55 }
 0x861   : > { %v1104_v6 = vpop.f32.mrb[12].mxu0 }
 0x862   : > { %v1916_v7 = vpop.f32.mrb[13].mxu0  ;;  %v1108_v8 = vsel %vm555_vm2, %v1104_v6, -inf }
 0x863   : > { %1109 = vmax.xlane.f32.xlu1 %v1108_v8  ;;  %v1813_v8 = vld [vmem:[%s2408_s7] ss:$0 sm:$0xff] }
 0x8f0   : > { %v1110_v9 = vpop.xlane.xlu1 %1109 }
 0x8f1   : > { %v1111_v11 = vsub.f32 %v1104_v6, %v1110_v9 }
 0x8f3   : > { %v1112_v12 = vmul.f32 1.442695, %v1111_v11  ;;  %v1814_v11 = vld [vmem:[%s2409_s8] ss:$0 sm:$0xff] }
 0x8f5   : > { %2056 = vpow2.f32 %v1112_v12 }
 0x8ff   : > { %v2057_v14 = vpop.eup %2056 }
 0x900   : > { %v1114_v15 = vsel %vm555_vm2, %v2057_v14, 0.0 }
 0x901   : > { %1115 = vadd.xlane.f32.xlu0 %v1114_v15  ;;  %v1643_v15 = vld [vmem:[%s2412_s11 + $0x30] sm:$0xff] }
 0x917   : > { %1270 = vrot.lane.b32.xlu0 %v2214_v26, %s2088_s30 }
 0x98e   : > { %v1116_v17 = vpop.xlane.xlu0 %1115 }
 0x98f   : > { %2058 = vrcp.f32 %v1116_v17 }
 0x992   : > { %v1271_v20 = vpop.permute.xlu0 %1270 }
 0x999   : > { %v2059_v18 = vpop.eup %2058 }
 0x99a   : > { %v1118_v19 = vmul.f32 %v2059_v18, %v2057_v14  ;;  %v1645_v18 = vld [vmem:[%s2412_s11 + $0x40] sm:$0xff] }
 0x99c   : > { %1920 = vmatmul.mubr.msk.f32.vlgmr.msra.gmra.mrb[2].mxu1 %vm555_vm2, %v1118_v19  ;;  %v1646_v19 = vld [vmem:[%s2412_s11 + $0x48] sm:$0xff] }
 0x99d   : > { %1928 = vmatpush3.xpose.msk.msra.mxu1 %vm555_vm2, %v1273_v16  ;;  %1929 = vmatprep.mubr.msk.f32.mxu1 %vm2077_vm1, %v2078_v13  ;;  %v1644_v16 = vld [vmem:[%s2412_s11 + $0x38] sm:$0xff] }
 0x99e   : > { %1937 = vmatprep.subr.mxu1 %v2078_v13  ;;  %v2010_v17 = vpack.c.bf16 %v1644_v16, %v1643_v15 }
 0x9a0   : > { %1930 = vmatmul.mubr.msk.f32.vlgmr.msra.gmra.mrb[4].mxu1 %vm555_vm2, %v1271_v20  ;;  %v2013_v20 = vpack.c.bf16 %v1646_v19, %v1645_v18 }
 0x9a1   : > { %1939 = vmatprep.mubr.msk.f32.mxu1 %vm2077_vm1, %v2078_v13  ;;  %1938 = vmatpush3.msra.mxu1 %v1435_v34 }
 0x9a2   : > { %2000 = vmatprep.subr.bf16.mxu1 %v2076_v10 }
 0xa6f   : > { %v1191_v22 = vpop.f32.mrb[2].mxu1 }
 0xa70   : > { %v1921_v23 = vpop.f32.mrb[3].mxu1  ;;  %1925 = vmatmul.mubr.msk.f32.vlgmr.msra.gmra.mrb[14].mxu0 %vm555_vm2, %v1191_v22  ;;  %v1648_v22 = vld [vmem:[%s2412_s11 + $0x58] sm:$0xff] }
 0xa71   : > { %1934 = vmatprep.mubr.msk.f32.mxu0 %vm2077_vm1, %v2078_v13  ;;  %v2016_v23 = vpack.c.bf16 %v1648_v22, %v1647_v21 }
 0xa73   : > { %v1344_v24 = vpop.f32.mrb[4].mxu1 }
 0xa74   : > { %v1931_v25 = vpop.f32.mrb[5].mxu1  ;;  %v1348_v27 = vsel %vm555_vm2, %v1344_v24, -inf }
 0xa75   : > { %1349 = vmax.xlane.f32.xlu1 %v1348_v27  ;;  %v1650_v25 = vld [vmem:[%s2412_s11 + $0x68] sm:$0xff] }
 0xa86   : > { %1359 = vrot.lane.b32.xlu1 %v2214_v26, %s2089_s16 }
 0xb02   : > { %v1350_v28 = vpop.xlane.xlu1 %1349 }
 0xb03   : > { %v1351_v29 = vsub.f32 %v1344_v24, %v1350_v28  ;;  %v1649_v24 = vld [vmem:[%s2412_s11 + $0x60] sm:$0xff]  ;;  %v1651_v28 = vld [vmem:[%s2412_s11 + $0x70] sm:$0xff] }
 0xb04   : > { %v2019_v27 = vpack.c.bf16 %v1650_v25, %v1649_v24 }
 0xb05   : > { %v1352_v30 = vmul.f32 1.442695, %v1351_v29  ;;  %v1652_v29 = vld [vmem:[%s2412_s11 + $0x78] sm:$0xff] }
 0xb06   : > { %v1360_v31 = vpop.permute.xlu1 %1359 }
 0xb07   : > { %2060 = vpow2.f32 %v1352_v30  ;;  %1933 = vmatpush3.msra.mxu0 %v1360_v31  ;;  %v2022_v30 = vpack.c.bf16 %v1652_v29, %v1651_v28  ;;  %v1815_v31 = vld [vmem:[%s2411_s10] ss:$0 sm:$0xff] }
 0xb08   : > { %1994 = vmatprep.subr.bf16.mxu0 %v2076_v10 }
 0xb11   : > { %v2061_v32 = vpop.eup %2060 }
 0xb12   : > { %v1354_v33 = vsel %vm555_vm2, %v2061_v32, 0.0 }
 0xb13   : > { %1355 = vadd.xlane.f32.xlu0 %v1354_v33 }
 0xb43   : > { %v1265_v26 = vpop.f32.mrb[14].mxu0 }
 0xb44   : > { %v1269_v35 = vadd.f32 %v1265_v26, %v1027_v4  ;;  %v1926_v36 = vpop.f32.mrb[15].mxu0 }
 0xba0   : > { %v1356_v37 = vpop.xlane.xlu0 %1355 }
 0xba1   : > { %2062 = vrcp.f32 %v1356_v37 }
 0xbab   : > { %v2063_v38 = vpop.eup %2062 }
 0xbac   : > { %v1358_v39 = vmul.f32 %v2063_v38, %v2061_v32  ;;  %v1817_v38 = vld [vmem:[%s2413_s12] ss:$0 sm:$0xff] }
 0xbae   : > { %1935 = vmatmul.mubr.msk.f32.vlgmr.msra.gmra.mrb[16].mxu0 %vm555_vm2, %v1358_v39 }
 0xbaf   : > { %1950 = vmatprep.mubr.msk.f32.mxu0 %vm2077_vm1, %v2078_v13 }
 0xc81   : > { %v1431_v40 = vpop.f32.mrb[16].mxu0 }
 0xc82   : > { %v1936_v41 = vpop.f32.mrb[17].mxu0  ;;  %1940 = vmatmul.mubr.msk.f32.vlgmr.msra.gmra.mrb[6].mxu1 %vm555_vm2, %v1431_v40 }
 0xc83   : > { %1985 = vmatprep.mubr.msk.f32.mxu1 %vm2077_vm1, %v2078_v13  ;;  %2002 = vmatpush3.bf16.msra.mxu1 %v2001_v61 }
 0xc84   : > { %2003 = vmatprep.subr.bf16.mxu1 %v2076_v10 }
 0xc87   : > { %2005 = vmatpush3.bf16.msra.mxu1 %v2004_v63 }
 0xc88   : > { %2006 = vmatprep.subr.bf16.mxu1 %v2076_v10 }
 0xc8b   : > { %2008 = vmatpush3.bf16.msra.mxu1 %v2007_v3 }
 0xc8c   : > { %2009 = vmatprep.subr.bf16.mxu1 %v2076_v10 }
 0xc8f   : > { %2011 = vmatpush3.bf16.msra.mxu1 %v2010_v17 }
 0xc90   : > { %2012 = vmatprep.subr.bf16.mxu1 %v2076_v10 }
 0xc93   : > { %2014 = vmatpush3.bf16.msra.mxu1 %v2013_v20 }
 0xc94   : > { %2015 = vmatprep.subr.bf16.mxu1 %v2076_v10 }
 0xc97   : > { %2017 = vmatpush3.bf16.msra.mxu1 %v2016_v23 }
 0xc98   : > { %2018 = vmatprep.subr.bf16.mxu1 %v2076_v10 }
 0xc9b   : > { %2020 = vmatpush3.bf16.msra.mxu1 %v2019_v27 }
 0xc9c   : > { %2021 = vmatprep.subr.bf16.mxu1 %v2076_v10 }
 0xc9f   : > { %2023 = vmatpush3.bf16.msra.mxu1 %v2022_v30 }
 0xd55   : > { %v1505_v42 = vpop.f32.mrb[6].mxu1 }
 0xd56   : > { %v1509_v44 = vadd.f32 %v1505_v42, %v1269_v35  ;;  %v1941_v45 = vpop.f32.mrb[7].mxu1 }
 0xd58   : > { %v1517_v46 = vadd.f32 %v1812_v43, %v1509_v44 }
 0xd5a   : > { %v2304_v47 = vadd.f32 %v1517_v46, %v2176_v0  ;;  %v1549_v0 = vld [vmem:[%s2410_s9 + $0x8] sm:$0xff] }
 0xd5b   : > { %v1995_v54 = vpack.c.bf16 %v1549_v0, %v1548_v53 }
 0xd5c   : > { %v1521_v48 = vsel %vm439_vm0, %v2304_v47, 0.0 }
 0xd5d   : > { %1522 = vadd.xlane.f32.xlu1 %v1521_v48  ;;  %1996 = vmatpush3.bf16.msra.mxu0 %v1995_v54 }
 0xd5e   : > { %1997 = vmatprep.subr.bf16.mxu0 %v2076_v10 }
 0xd61   : > { %1999 = vmatpush3.bf16.msra.mxu0 %v1998_v57 }
 0xdea   : > { %v1523_v49 = vpop.xlane.xlu1 %1522 }
 0xdeb   : > { %v1524_v50 = vmul.f32 0.03125, %v1523_v49 }
 0xded   : > { %v1525_v51 = vsub.f32 %v2304_v47, %v1524_v50 }
 0xdef   : > { %v1526_v13 = vmul.f32 %v1525_v51, %v1525_v51 }
 0xdf1   : > { %v1527_v52 = vsel %vm439_vm0, %v1526_v13, 0.0 }
 0xdf2   : > { %1528 = vadd.xlane.f32.xlu0 %v1527_v52 }
 0xe7f   : > { %v1529_v4 = vpop.xlane.xlu0 %1528 }
 0xe80   : > { %v1530_v5 = vmul.f32 0.03125, %v1529_v4 }
 0xe82   : > { %v1531_v6 = vadd.f32 1e-05, %v1530_v5 }
 0xe84   : > { %2064 = vrsqrt.f32 %v1531_v6 }
 0xe8e   : > { %v2065_v7 = vpop.eup %2064 }
 0xe8f   : > { %v1533_v9 = vmul.f32 %v2065_v7, %v1525_v51 }
 0xe91   : > { %v1540_v12 = vmul.f32 %v1813_v8, %v1533_v9 }
 0xe93   : > { %v1547_v14 = vadd.f32 %v1814_v11, %v1540_v12 }
 0xe95   : > { %1951 = vmatmul.mubr.msk.f32.vlgmr.msra.gmra.mrb[18].mxu0 %vm439_vm0, %v1547_v14 }
 0xf68   : > { %v1628_v32 = vpop.f32.mrb[18].mxu0 }
 0xf69   : > { %v1629_v33 = vadd.f32 %v1815_v31, %v1628_v32  ;;  %v1952_v34 = vpop.f32.mrb[19].mxu0 }
 0xf6b   : > { %v1633_v26 = vmul.f32 0.70710677, %v1629_v33  ;;  %v1632_v35 = vmul.f32 0.5, %v1629_v33 }
 0xf6d   : > { %2066 = verf.f32 %v1633_v26 }
 0xf77   : > { %v2067_v10 = vpop.eup %2066 }
 0xf78   : > { %v1635_v36 = vadd.f32 1.0, %v2067_v10 }
 0xf7a   : > { %v1636_v37 = vmul.f32 %v1635_v36, %v1632_v35 }
 0xf7c   : > { %1986 = vmatmul.mubr.f32.vlgmr.msra.gmra.mrb[8].mxu1 %v1636_v37 }
0x104f   : > { %v1726_v39 = vpop.f32.mrb[8].mxu1 }
0x1050   : > { %v1727_v40 = vadd.f32 %v1817_v38, %v1726_v39  ;;  %v1987_v41 = vpop.f32.mrb[9].mxu1 }
0x1052   : > { %v1730_v42 = vadd.f32 %v1727_v40, %v2304_v47 }
0x1054   : > { %1731 = vst.msk [vmem:[%s435_s15] sm:$0xff] %vm439_vm0, %v1730_v42 }
0x1055 PF: > { %s23_s25 = sadd.s32 1, %s2074_s25  }
0x1056   : > { %p20_p4 = scmp.ge.s32.totalorder %s23_s25, 4  }
0x1058   :  { %22 = sbr.rel (!%p20_p4) target bundleno = 1 (0x1), region = 102 }

</bundles_post_ra>
